<compile_context>
chip_gen: v7x
topology: tpu7x:2x2x1
jax: 0.10.0
libtpu: 0.0.40
codegen_flags: <defaults>
</compile_context>

<pallas_src>
import math
import numpy as np
import jax
import jax.numpy as jnp
from jax.experimental import pallas as pl
from jax.experimental.pallas import tpu as pltpu

# ----------------------------- configuration --------------------------------
SAMPLE_RATE = 8000.0          # Hz (small synthetic setting)
FRAME_LEN_MS = 25.0           # kaldi default
FRAME_SHIFT_MS = 10.0         # kaldi default
NUM_MEL_BINS = 40             # module default
PREEMPH = 0.97                # kaldi default preemphasis_coefficient
LOW_FREQ = 20.0               # kaldi default
EPS = 1.1920928955078125e-07  # torch.finfo(torch.float).eps

FRAME_LEN = int(SAMPLE_RATE * FRAME_LEN_MS / 1000.0)      # 200 samples
FRAME_SHIFT = int(SAMPLE_RATE * FRAME_SHIFT_MS / 1000.0)  # 80 samples
PADDED = 1 << (FRAME_LEN - 1).bit_length()                # 256 (round_to_power_of_two)
# Kaldi zero-pads the Nyquist column of the mel banks, so only the first
# PADDED//2 FFT bins contribute -> we compute exactly those 128 bins.
NUM_FFT_BINS = PADDED // 2                                # 128
OUT_LANES = 128                                           # lane-dense output width
MAX_TF = 512                                              # max frames per grid tile


def _round_up(x, m):
    return (x + m - 1) // m * m


# --------------------------- constant construction --------------------------
def _mel_scale(freq):
    return 1127.0 * np.log(1.0 + freq / 700.0)


def _get_mel_banks(num_bins, padded_window_size, sample_freq, low_freq, high_freq):
    # Faithful to torchaudio.compliance.kaldi.get_mel_banks (no VTLN).
    nyquist = 0.5 * sample_freq
    if high_freq <= 0.0:
        high_freq = nyquist + high_freq
    fft_bin_width = sample_freq / padded_window_size
    mel_low = _mel_scale(low_freq)
    mel_high = _mel_scale(high_freq)
    mel_delta = (mel_high - mel_low) / (num_bins + 1)

    bins = np.arange(num_bins, dtype=np.float64)[:, None]
    left_mel = mel_low + bins * mel_delta
    center_mel = mel_low + (bins + 1.0) * mel_delta
    right_mel = mel_low + (bins + 2.0) * mel_delta

    freqs = fft_bin_width * np.arange(padded_window_size // 2, dtype=np.float64)[None, :]
    mel = _mel_scale(freqs)
    up_slope = (mel - left_mel) / (center_mel - left_mel)
    down_slope = (right_mel - mel) / (right_mel - center_mel)
    banks = np.maximum(0.0, np.minimum(up_slope, down_slope))
    return banks.astype(np.float32)  # (num_bins, padded//2)


def _build_folded_dft():
    """Fold DC-removal, pre-emphasis and the povey window into [cos | sin].

    Treating each padded frame x as a row vector (zeros in the pad region),
    the processed frame is  z = x @ D @ P @ diag(w)  with
      D : mean subtraction over the FRAME_LEN real samples,
      P : pre-emphasis with replicate left padding,
      w : povey window (zero in the padded region).
    We precompute M = D @ P @ (w[:, None] * [cos | sin]) so the kernel only
    does matmuls + power + log.
    """
    # DC removal.
    D = np.eye(PADDED, dtype=np.float64)
    D[:FRAME_LEN, :FRAME_LEN] -= 1.0 / FRAME_LEN
    # Pre-emphasis: z[j] = x[j] - 0.97 * x[max(j-1, 0)].
    P = np.eye(PADDED, dtype=np.float64)
    P[0, 0] -= PREEMPH
    for j in range(1, FRAME_LEN):
        P[j - 1, j] = -PREEMPH
    # Povey window, zero outside the real frame (kaldi windows then zero-pads).
    n = np.arange(FRAME_LEN, dtype=np.float64)
    hann = 0.5 - 0.5 * np.cos(2.0 * math.pi * n / (FRAME_LEN - 1))
    w = np.zeros((PADDED,), dtype=np.float64)
    w[:FRAME_LEN] = np.power(hann, 0.85)
    # DFT bases (sin sign irrelevant: only the power spectrum is used).
    nn = np.arange(PADDED, dtype=np.float64)[:, None]
    kk = np.arange(NUM_FFT_BINS, dtype=np.float64)[None, :]
    ang = 2.0 * math.pi * nn * kk / PADDED
    dft = np.concatenate([np.cos(ang), np.sin(ang)], axis=1)  # (PADDED, 2*NUM_FFT_BINS)
    folded = D @ P @ (w[:, None] * dft)
    return folded.astype(np.float32)                          # (256, 256)


def _build_mel_matrix():
    banks = _get_mel_banks(NUM_MEL_BINS, PADDED, SAMPLE_RATE, LOW_FREQ, 0.0)  # (40, 128)
    mel_t = np.zeros((NUM_FFT_BINS, OUT_LANES), dtype=np.float32)
    mel_t[:, :NUM_MEL_BINS] = banks.T       # zero-pad to 128 lanes (lane-dense stores)
    return mel_t


_FOLDED_DFT = _build_folded_dft()   # (PADDED, 2*NUM_FFT_BINS)
_MEL_PADDED = _build_mel_matrix()   # (NUM_FFT_BINS, OUT_LANES)


# ------------------------------- Pallas kernel -------------------------------
def fbank_kernel(frames_ref, dft_ref, mel_ref, out_ref):
    # frames_ref : (TF, PADDED)                  zero-padded raw frames
    # dft_ref    : (PADDED, 2*NUM_FFT_BINS)      folded (DC+preemph+window) x [cos|sin]
    # mel_ref    : (NUM_FFT_BINS, OUT_LANES)     mel filterbank^T, zero-padded lanes
    # out_ref    : (TF, OUT_LANES)               log-mel (first NUM_MEL_BINS lanes valid)
    x = frames_ref[...]
    # Single N=256 matmul produces [real | imag] of the rDFT (fills the MXU width).
    y = jnp.dot(x, dft_ref[...], preferred_element_type=jnp.float32)
    re = y[:, :NUM_FFT_BINS]
    im = y[:, NUM_FFT_BINS:]
    power = re * re + im * im
    # Mel filterbank + log.
    mel = jnp.dot(power, mel_ref[...], preferred_element_type=jnp.float32)
    out_ref[...] = jnp.log(jnp.maximum(mel, EPS))


# ------------------------------ wrapper (glue) -------------------------------
def extract_audio_feature(waveform):
    """waveform: (channels, num_samples) float32 -> (1, num_mel_bins, num_frames)."""
    wav = waveform[0]  # channel = -1 in kaldi compliance maps to channel 0
    num_samples = wav.shape[0]
    num_frames = 1 + (num_samples - FRAME_LEN) // FRAME_SHIFT  # snip_edges=True

    # Frame extraction (strided gather) + zero pad to power-of-two length.
    idx = (jnp.arange(num_frames)[:, None] * FRAME_SHIFT
           + jnp.arange(FRAME_LEN)[None, :])
    frames = wav[idx].astype(jnp.float32)                          # (F, FRAME_LEN)
    frames = jnp.pad(frames, ((0, 0), (0, PADDED - FRAME_LEN)))    # (F, PADDED)

    # Tile the frame axis; pad F up to a multiple of the tile.
    tf = min(MAX_TF, _round_up(num_frames, 8))
    f_pad = _round_up(num_frames, tf)
    if f_pad != num_frames:
        frames = jnp.pad(frames, ((0, f_pad - num_frames), (0, 0)))

    dft_m = jnp.asarray(_FOLDED_DFT)
    mel_m = jnp.asarray(_MEL_PADDED)

    # VMEM budget: double-buffered frame/out tiles + (possibly double-buffered) constants.
    footprint = (2 * tf * PADDED * 4 + 2 * tf * OUT_LANES * 4
                 + 2 * PADDED * 2 * NUM_FFT_BINS * 4
                 + 2 * NUM_FFT_BINS * OUT_LANES * 4)
    vmem_limit = min(96 * 1024 * 1024, max(8 * 1024 * 1024, 2 * footprint))

    y = pl.pallas_call(
        fbank_kernel,
        out_shape=jax.ShapeDtypeStruct((f_pad, OUT_LANES), jnp.float32),
        grid=(f_pad // tf,),
        in_specs=[
            pl.BlockSpec((tf, PADDED), lambda i: (i, 0)),
            pl.BlockSpec((PADDED, 2 * NUM_FFT_BINS), lambda i: (0, 0)),
            pl.BlockSpec((NUM_FFT_BINS, OUT_LANES), lambda i: (0, 0)),
        ],
        out_specs=pl.BlockSpec((tf, OUT_LANES), lambda i: (i, 0)),
        compiler_params=pltpu.CompilerParams(
            dimension_semantics=("parallel",),
            vmem_limit_bytes=int(vmem_limit),
        ),
    )(frames, dft_m, mel_m)

    # (f_pad, OUT_LANES) -> (F, num_mel_bins) -> transpose(0,1).unsqueeze(0)
    y = y[:num_frames, :NUM_MEL_BINS]
    return jnp.transpose(y, (1, 0))[None, :, :]


# ----------------------------------- main ------------------------------------
if __name__ == "__main__":
    # synthetic "loaded waveform": 1 channel, 8 frames worth of samples
    num_frames = 8
    num_samples = FRAME_LEN + (num_frames - 1) * FRAME_SHIFT  # 760
    key = jax.random.PRNGKey(0)
    waveform = jax.random.uniform(key, (1, num_samples), jnp.float32,
                                  minval=-1.0, maxval=1.0)
    # TODO(synk): torchaudio.load / real file decoding has no Pallas equivalent;
    # the waveform is synthesized in-script instead.

    feats = extract_audio_feature(waveform)
    feats = jax.block_until_ready(feats)

    assert feats.shape == (1, NUM_MEL_BINS, num_frames), feats.shape
    assert bool(jnp.all(jnp.isfinite(feats)))
    print("KERNEL_OK")
</pallas_src>

<mosaic_0001>
module attributes {stable_mosaic.version = 11 : i64} {
  func.func @fbank_kernel(%arg0: i32, %arg1: memref<8x256xf32, #tpu.memory_space<vmem>>, %arg2: memref<256x256xf32, #tpu.memory_space<vmem>>, %arg3: memref<128x128xf32, #tpu.memory_space<vmem>>, %arg4: memref<8x128xf32, #tpu.memory_space<vmem>>) attributes {dimension_semantics = [#tpu.dimension_semantics<parallel>], iteration_bounds = array<i64: 1>, scalar_prefetch = 0 : i64, scratch_operands = 0 : i64, tpu.core_type = #tpu.core_type<tc>, window_params = [{transform_indices = @transform_0, window_bounds = array<i64: 8, 256>}, {pipeline_mode = #tpu.pipeline_mode<synchronous>, transform_indices = @transform_1, window_bounds = array<i64: 256, 256>}, {pipeline_mode = #tpu.pipeline_mode<synchronous>, transform_indices = @transform_2, window_bounds = array<i64: 128, 128>}, {transform_indices = @transform_3, window_bounds = array<i64: 8, 128>}]} {
    %c0 = arith.constant 0 : index
    %c0_0 = arith.constant 0 : index
    %0 = vector.load %arg1[%c0, %c0_0] : memref<8x256xf32, #tpu.memory_space<vmem>>, vector<8x256xf32>
    %c0_1 = arith.constant 0 : index
    %c0_2 = arith.constant 0 : index
    %1 = vector.load %arg2[%c0_1, %c0_2] : memref<256x256xf32, #tpu.memory_space<vmem>>, vector<256x256xf32>
    %cst = arith.constant dense<0.000000e+00> : vector<8x256xf32>
    %2 = tpu.matmul %0, %1, %cst {dimension_numbers = #tpu.dot_dimension_numbers<[1], [0], [0], [1], [0, 0, 1, 1], [], []>} : vector<8x256xf32>, vector<256x256xf32>, vector<8x256xf32> -> vector<8x256xf32>
    %3 = vector.extract_strided_slice %2 {offsets = [0, 0], sizes = [8, 128], strides = [1, 1]} : vector<8x256xf32> to vector<8x128xf32>
    %4 = vector.extract_strided_slice %2 {offsets = [0, 128], sizes = [8, 128], strides = [1, 1]} : vector<8x256xf32> to vector<8x128xf32>
    %5 = arith.mulf %3, %3 : vector<8x128xf32>
    %6 = arith.mulf %4, %4 : vector<8x128xf32>
    %7 = arith.addf %5, %6 : vector<8x128xf32>
    %c0_3 = arith.constant 0 : index
    %c0_4 = arith.constant 0 : index
    %8 = vector.load %arg3[%c0_3, %c0_4] : memref<128x128xf32, #tpu.memory_space<vmem>>, vector<128x128xf32>
    %cst_5 = arith.constant dense<0.000000e+00> : vector<8x128xf32>
    %9 = tpu.matmul %7, %8, %cst_5 {dimension_numbers = #tpu.dot_dimension_numbers<[1], [0], [0], [1], [0, 0, 1, 1], [], []>} : vector<8x128xf32>, vector<128x128xf32>, vector<8x128xf32> -> vector<8x128xf32>
    %cst_6 = arith.constant 1.1920929E-7 : f32
    %10 = vector.broadcast %cst_6 : f32 to vector<8x128xf32>
    %11 = arith.maximumf %9, %10 : vector<8x128xf32>
    %12 = math.log %11 : vector<8x128xf32>
    %c0_7 = arith.constant 0 : index
    %c0_8 = arith.constant 0 : index
    %13 = vector.load %arg4[%c0_7, %c0_8] : memref<8x128xf32, #tpu.memory_space<vmem>>, vector<8x128xf32>
    tpu.vector_store %arg4[%c0_7, %c0_8], %12 {strides = array<i32>} : memref<8x128xf32, #tpu.memory_space<vmem>>, vector<8x128xf32>,
    return
  }
  func.func @transform_0(%arg0: i32) -> (i32, i32) {
    %c0_i32 = arith.constant 0 : i32
    %c0_i32_0 = arith.constant 0 : i32
    return %arg0, %c0_i32 : i32, i32
  }
  func.func @transform_1(%arg0: i32) -> (i32, i32) {
    %c0_i32 = arith.constant 0 : i32
    %c0_i32_0 = arith.constant 0 : i32
    %c0_i32_1 = arith.constant 0 : i32
    return %c0_i32, %c0_i32_0 : i32, i32
  }
  func.func @transform_2(%arg0: i32) -> (i32, i32) {
    %c0_i32 = arith.constant 0 : i32
    %c0_i32_0 = arith.constant 0 : i32
    %c0_i32_1 = arith.constant 0 : i32
    return %c0_i32, %c0_i32_0 : i32, i32
  }
  func.func @transform_3(%arg0: i32) -> (i32, i32) {
    %c0_i32 = arith.constant 0 : i32
    %c0_i32_0 = arith.constant 0 : i32
    return %arg0, %c0_i32 : i32, i32
  }
}

</mosaic_0001>

<bundles_post_ra>
// kernel: tpu_custom_call.1
= control target key start
LH: loop header
LB: loop body
LE: loop exit
PB: predicated region body
PF: predicated region fallthrough
CT: control target
= control target key end

     0   :  { %8 = vsyncpa [#allocation3], 0  ;;  %s634_s0 = inlined_call_operand.hbm [shape: f32[8,256], index: 0, kind: input, shape index: {}]   ;;  %s635_s1 = inlined_call_operand.hbm [shape: f32[256,256], index: 1, kind: input, shape index: {}]   ;;  %s636_s2 = inlined_call_operand.hbm [shape: f32[128,128], index: 2, kind: input, shape index: {}]   ;;  %s637_s3 = inlined_call_operand.hbm [shape: f32[8,128], index: 3, kind: output, shape index: {}]  }
   0x1   :  { %9 = vsyncpa [#allocation6], 0 }
   0x2   :  { %10 = vsyncpa [#allocation4], 0  ;;  %s547_s12 = smov [#allocation5]   ;;  %s453_s16 = scalar_lea.hbm %s635_s1, 8192 }
   0x3   :  { %s26_s13 = sshll.u32 %s547_s12, 4  ;;  %p454_p0 = scmp.ne.s32.totalorder %s635_s1, %s453_s16  ;;  %s27_s13 = int_to_ptr.vmem [resolvable:$true] %s26_s13 }
   0x4   :  { %p457_p1 = scmp.lt.u32.totalorder %s453_s16, %s635_s1 }
   0x6   :  { %p459_p2 = pnand %p457_p1, %p454_p0 }
   0x8   :  { %462 = shalt.err (!%p459_p2)
}
   0x9   :  { %s463_s21 = scalar_lea.vmem %s27_s13, 8192  ;;  %p468_p4 = scmp.lt.s32.totalorder %s27_s13, %s27_s13 }
   0xa   :  { %p464_p3 = scmp.ne.s32.totalorder %s27_s13, %s463_s21  ;;  %p469_p5 = scmp.lt.s32.totalorder %s463_s21, %s463_s21 }
   0xc   :  { %p470_p6 = por %p469_p5, %p468_p4 }
   0xe   :  { %p471_p7 = pnand %p470_p6, %p464_p3 }
  0x10   :  { %474 = shalt.err (!%p471_p7)
}
  0x11   :  { %s548_s22 = smov 256   ;;  %s549_s23 = smov 16  }
  0x12   :  { %32 = dma.hbm_to_vmem [thread:$0]  %s635_s1, 8192, %s27_s13, [#allocation6], %s548_s22, %s548_s22, %s549_s23  }
  0x13   :  { %s550_s26 = smov [#allocation2]   ;;  %s551_s28 = smov [#allocation7]  }
  0x14   :  { %s17_s27 = sshll.u32 %s550_s26, 4  ;;  %s38_s29 = sshll.u32 %s551_s28, 4  ;;  %s18_s27 = int_to_ptr.vmem [resolvable:$true] %s17_s27  ;;  %s39_s29 = int_to_ptr.vmem [resolvable:$true] %s38_s29 }
  0x15   :  { %s475_s5 = scalar_lea.hbm %s634_s0, 256 }
  0x16   :  { %p476_p8 = scmp.ne.s32.totalorder %s634_s0, %s475_s5  ;;  %p479_p9 = scmp.lt.u32.totalorder %s475_s5, %s634_s0 }
  0x18   :  { %p481_p10 = pnand %p479_p9, %p476_p8 }
  0x1a   :  { %484 = shalt.err (!%p481_p10)
}
  0x1b   :  { %s485_s1 = scalar_lea.vmem %s18_s27, 256  ;;  %p490_p12 = scmp.lt.s32.totalorder %s18_s27, %s18_s27 }
  0x1c   :  { %p486_p11 = scmp.ne.s32.totalorder %s18_s27, %s485_s1  ;;  %p491_p13 = scmp.lt.s32.totalorder %s485_s1, %s485_s1 }
  0x1e   :  { %p492_p0 = por %p491_p13, %p490_p12 }
  0x20   :  { %p493_p1 = pnand %p492_p0, %p486_p11 }
  0x22   :  { %496 = shalt.err (!%p493_p1)
}
  0x23   :  { %20 = dma.hbm_to_vmem [thread:$0]  %s634_s0, 256, %s18_s27, [#allocation3]  }
  0x24   :  { %s497_s14 = scalar_lea.hbm %s636_s2, 2048 }
  0x25   :  { %p498_p2 = scmp.ne.s32.totalorder %s636_s2, %s497_s14  ;;  %p501_p3 = scmp.lt.u32.totalorder %s497_s14, %s636_s2 }
  0x27   :  { %p503_p4 = pnand %p501_p3, %p498_p2 }
  0x29   :  { %506 = shalt.err (!%p503_p4)
}
  0x2a   :  { %s507_s19 = scalar_lea.vmem %s39_s29, 2048  ;;  %p512_p6 = scmp.lt.s32.totalorder %s39_s29, %s39_s29 }
  0x2b   :  { %p508_p5 = scmp.ne.s32.totalorder %s39_s29, %s507_s19  ;;  %p513_p7 = scmp.lt.s32.totalorder %s507_s19, %s507_s19 }
  0x2d   :  { %p514_p8 = por %p513_p7, %p512_p6 }
  0x2f   :  { %p515_p9 = pnand %p514_p8, %p508_p5 }
  0x31   :  { %518 = shalt.err (!%p515_p9)
}
  0x32   :  { %s552_s0 = smov 128   ;;  %s553_s20 = smov 8  }
  0x33   :  { %44 = dma.hbm_to_vmem [thread:$0]  %s636_s2, 2048, %s39_s29, [#allocation6], %s552_s0, %s552_s0, %s553_s20  }
  0x34   :  { %541 = dma.done.wait [#allocation3], 256  }
  0x35   :  { %542 = vsyncadd [#allocation3], 4294967040 }
  0x36   :  { %543 = dma.done.wait [#allocation6], 10240  }
  0x37   :  { %544 = vsyncadd [#allocation6], 4294957056  ;;  %v554_v0 = vmov 0.0|0.0   ;;  %v57_v1 = vld [vmem:[#allocation5 + $0x8] sm:$0xff]  ;;  %v59_v2 = vld [vmem:[#allocation5 + $0x18] sm:$0xff]  ;;  %vm555_vm0 = vmmov 0  }
  0x38   :  { %416 = vmatprep.subr.bf16.mxu1 %v554_v0  ;;  %v56_v3 = vld [vmem:[#allocation5] sm:$0xff]  ;;  %v352_v4 = vpack.c.bf16 %v59_v2, %v57_v1  ;;  %v58_v5 = vld [vmem:[#allocation5 + $0x10] sm:$0xff]  ;;  %v61_v6 = vld [vmem:[#allocation5 + $0x28] sm:$0xff]  ;;  %s557_s2 = smov [#allocation8]  }
  0x39   :  { %v63_v7 = vld [vmem:[#allocation5 + $0x38] sm:$0xff]  ;;  %v354_v8 = vpack.c.bf16 %v58_v5, %v56_v3  ;;  %v60_v10 = vld [vmem:[#allocation5 + $0x20] sm:$0xff]  ;;  %v62_v11 = vld [vmem:[#allocation5 + $0x30] sm:$0xff]  ;;  %s290_s23 = sshll.u32 %s557_s2, 4  ;;  %s291_s23 = int_to_ptr.vmem [resolvable:$true] %s290_s23 }
  0x3a   :  { %v356_v9 = vpack.c.bf16 %v63_v7, %v61_v6  ;;  %v65_v12 = vld [vmem:[#allocation5 + $0x48] sm:$0xff]  ;;  %353 = vmatprep.subr.bf16.mxu0 %v352_v4  ;;  %v67_v13 = vld [vmem:[#allocation5 + $0x58] sm:$0xff]  ;;  %v358_v14 = vpack.c.bf16 %v62_v11, %v60_v10  ;;  %v64_v16 = vld [vmem:[#allocation5 + $0x40] sm:$0xff]  ;;  %s519_s24 = scalar_lea.vmem %s291_s23, 128  ;;  %p524_p11 = scmp.lt.s32.totalorder %s291_s23, %s291_s23 }
  0x3b   :  { %355 = vmatpush1.bf16.msra.mxu0 %v354_v8  ;;  %v360_v15 = vpack.c.bf16 %v67_v13, %v65_v12  ;;  %v66_v17 = vld [vmem:[#allocation5 + $0x50] sm:$0xff]  ;;  %v69_v18 = vld [vmem:[#allocation5 + $0x68] sm:$0xff]  ;;  %v71_v19 = vld [vmem:[#allocation5 + $0x78] sm:$0xff]  ;;  %p520_p10 = scmp.ne.s32.totalorder %s291_s23, %s519_s24  ;;  %p525_p12 = scmp.lt.s32.totalorder %s519_s24, %s519_s24 }
  0x3c   :  { %357 = vmatprep.subr.bf16.mxu0 %v356_v9  ;;  %v362_v20 = vpack.c.bf16 %v66_v17, %v64_v16  ;;  %v364_v21 = vpack.c.bf16 %v71_v19, %v69_v18  ;;  %v68_v22 = vld [vmem:[#allocation5 + $0x60] sm:$0xff]  ;;  %v70_v23 = vld [vmem:[#allocation5 + $0x70] sm:$0xff]  ;;  %v73_v24 = vld [vmem:[#allocation5 + $0x88] sm:$0xff] }
  0x3d   :  { %v75_v25 = vld [vmem:[#allocation5 + $0x98] sm:$0xff]  ;;  %v366_v26 = vpack.c.bf16 %v70_v23, %v68_v22  ;;  %v72_v28 = vld [vmem:[#allocation5 + $0x80] sm:$0xff]  ;;  %v74_v29 = vld [vmem:[#allocation5 + $0x90] sm:$0xff]  ;;  %p526_p13 = por %p525_p12, %p524_p11 }
  0x3e   :  { %v368_v27 = vpack.c.bf16 %v75_v25, %v73_v24  ;;  %v77_v30 = vld [vmem:[#allocation5 + $0xa8] sm:$0xff]  ;;  %v79_v31 = vld [vmem:[#allocation5 + $0xb8] sm:$0xff]  ;;  %v370_v32 = vpack.c.bf16 %v74_v29, %v72_v28  ;;  %v76_v34 = vld [vmem:[#allocation5 + $0xa0] sm:$0xff] }
  0x3f   :  { %359 = vmatpush1.bf16.msra.mxu0 %v358_v14  ;;  %v372_v33 = vpack.c.bf16 %v79_v31, %v77_v30  ;;  %v78_v35 = vld [vmem:[#allocation5 + $0xb0] sm:$0xff]  ;;  %v81_v36 = vld [vmem:[#allocation5 + $0xc8] sm:$0xff]  ;;  %v83_v37 = vld [vmem:[#allocation5 + $0xd8] sm:$0xff]  ;;  %p527_p0 = pnand %p526_p13, %p520_p10 }
  0x40   :  { %361 = vmatprep.subr.bf16.mxu0 %v360_v15  ;;  %v374_v38 = vpack.c.bf16 %v78_v35, %v76_v34  ;;  %v80_v39 = vld [vmem:[#allocation5 + $0xc0] sm:$0xff]  ;;  %v82_v40 = vld [vmem:[#allocation5 + $0xd0] sm:$0xff]  ;;  %v376_v41 = vpack.c.bf16 %v83_v37, %v81_v36  ;;  %v85_v42 = vld [vmem:[#allocation5 + $0xe8] sm:$0xff] }
  0x41   :  { %v87_v43 = vld [vmem:[#allocation5 + $0xf8] sm:$0xff]  ;;  %v194_v45 = vld [vmem:[#allocation7] sm:$0xff]  ;;  %v195_v46 = vld [vmem:[#allocation7 + $0x8] sm:$0xff]  ;;  %v378_v50 = vpack.c.bf16 %v82_v40, %v80_v39 }
  0x42   :  { %v55_v44 = vld [vmem:[#allocation2 + $0x8] sm:$0xff]  ;;  %v196_v47 = vld [vmem:[#allocation7 + $0x10] sm:$0xff]  ;;  %v417_v48 = vpack.c.bf16 %v195_v46, %v194_v45  ;;  %v380_v51 = vpack.c.bf16 %v87_v43, %v85_v42  ;;  %v84_v52 = vld [vmem:[#allocation5 + $0xe0] sm:$0xff] }
  0x43   :  { %363 = vmatpush1.bf16.msra.mxu0 %v362_v20  ;;  %184 = vmatprep.mubr.f32.mxu0 %v55_v44  ;;  %v197_v49 = vld [vmem:[#allocation7 + $0x18] sm:$0xff]  ;;  %v86_v53 = vld [vmem:[#allocation5 + $0xf0] sm:$0xff]  ;;  %v89_v54 = vld [vmem:[#allocation5 + $0x108] sm:$0xff] }
  0x44   :  { %365 = vmatprep.subr.bf16.mxu0 %v364_v21  ;;  %418 = vmatpush3.bf16.msra.mxu1 %v417_v48  ;;  %v420_v55 = vpack.c.bf16 %v197_v49, %v196_v47  ;;  %v91_v56 = vld [vmem:[#allocation5 + $0x118] sm:$0xff]  ;;  %v198_v57 = vld [vmem:[#allocation7 + $0x20] sm:$0xff]  ;;  %v199_v58 = vld [vmem:[#allocation7 + $0x28] sm:$0xff]  ;;  %v382_v59 = vpack.c.bf16 %v86_v53, %v84_v52 }
  0x45   :  { %419 = vmatprep.subr.bf16.mxu1 %v554_v0  ;;  %v384_v60 = vpack.c.bf16 %v91_v56, %v89_v54  ;;  %v88_v61 = vld [vmem:[#allocation5 + $0x100] sm:$0xff]  ;;  %v90_v62 = vld [vmem:[#allocation5 + $0x110] sm:$0xff]  ;;  %v93_v63 = vld [vmem:[#allocation5 + $0x128] sm:$0xff]  ;;  %v423_v1 = vpack.c.bf16 %v199_v58, %v198_v57 }
  0x46   :  { %v95_v2 = vld [vmem:[#allocation5 + $0x138] sm:$0xff]  ;;  %v200_v3 = vld [vmem:[#allocation7 + $0x30] sm:$0xff]  ;;  %v386_v5 = vpack.c.bf16 %v90_v62, %v88_v61  ;;  %v92_v7 = vld [vmem:[#allocation5 + $0x120] sm:$0xff] }
  0x47   :  { %367 = vmatpush1.bf16.msra.mxu0 %v366_v26  ;;  %v201_v4 = vld [vmem:[#allocation7 + $0x38] sm:$0xff]  ;;  %v388_v6 = vpack.c.bf16 %v95_v2, %v93_v63  ;;  %v94_v8 = vld [vmem:[#allocation5 + $0x130] sm:$0xff]  ;;  %v97_v9 = vld [vmem:[#allocation5 + $0x148] sm:$0xff] }
  0x48   :  { %369 = vmatprep.subr.bf16.mxu0 %v368_v27  ;;  %421 = vmatpush3.bf16.msra.mxu1 %v420_v55  ;;  %v426_v10 = vpack.c.bf16 %v201_v4, %v200_v3  ;;  %v99_v11 = vld [vmem:[#allocation5 + $0x158] sm:$0xff]  ;;  %v202_v12 = vld [vmem:[#allocation7 + $0x40] sm:$0xff]  ;;  %v203_v13 = vld [vmem:[#allocation7 + $0x48] sm:$0xff]  ;;  %v390_v14 = vpack.c.bf16 %v94_v8, %v92_v7 }
  0x49   :  { %422 = vmatprep.subr.bf16.mxu1 %v554_v0  ;;  %v392_v15 = vpack.c.bf16 %v99_v11, %v97_v9  ;;  %v96_v16 = vld [vmem:[#allocation5 + $0x140] sm:$0xff]  ;;  %v98_v17 = vld [vmem:[#allocation5 + $0x150] sm:$0xff]  ;;  %v101_v18 = vld [vmem:[#allocation5 + $0x168] sm:$0xff]  ;;  %v429_v19 = vpack.c.bf16 %v203_v13, %v202_v12 }
  0x4a   :  { %v103_v20 = vld [vmem:[#allocation5 + $0x178] sm:$0xff]  ;;  %v204_v21 = vld [vmem:[#allocation7 + $0x50] sm:$0xff]  ;;  %v394_v23 = vpack.c.bf16 %v98_v17, %v96_v16  ;;  %v100_v25 = vld [vmem:[#allocation5 + $0x160] sm:$0xff] }
  0x4b   :  { %371 = vmatpush1.bf16.msra.mxu0 %v370_v32  ;;  %v205_v22 = vld [vmem:[#allocation7 + $0x58] sm:$0xff]  ;;  %v396_v24 = vpack.c.bf16 %v103_v20, %v101_v18  ;;  %v102_v26 = vld [vmem:[#allocation5 + $0x170] sm:$0xff]  ;;  %v105_v27 = vld [vmem:[#allocation5 + $0x188] sm:$0xff] }
  0x4c   :  { %373 = vmatprep.subr.bf16.mxu0 %v372_v33  ;;  %424 = vmatpush3.bf16.msra.mxu1 %v423_v1  ;;  %v432_v28 = vpack.c.bf16 %v205_v22, %v204_v21  ;;  %v107_v29 = vld [vmem:[#allocation5 + $0x198] sm:$0xff]  ;;  %v206_v30 = vld [vmem:[#allocation7 + $0x60] sm:$0xff]  ;;  %v207_v31 = vld [vmem:[#allocation7 + $0x68] sm:$0xff]  ;;  %v398_v32 = vpack.c.bf16 %v102_v26, %v100_v25 }
  0x4d   :  { %425 = vmatprep.subr.bf16.mxu1 %v554_v0  ;;  %v400_v33 = vpack.c.bf16 %v107_v29, %v105_v27  ;;  %v104_v34 = vld [vmem:[#allocation5 + $0x180] sm:$0xff]  ;;  %v106_v35 = vld [vmem:[#allocation5 + $0x190] sm:$0xff]  ;;  %v435_v36 = vpack.c.bf16 %v207_v31, %v206_v30  ;;  %v109_v37 = vld [vmem:[#allocation5 + $0x1a8] sm:$0xff] }
  0x4e   :  { %v402_v39 = vpack.c.bf16 %v106_v35, %v104_v34  ;;  %v110_v42 = vld [vmem:[#allocation5 + $0x1b0] sm:$0xff]  ;;  %v113_v43 = vld [vmem:[#allocation5 + $0x1c8] sm:$0xff]  ;;  %v115_v44 = vld [vmem:[#allocation5 + $0x1d8] sm:$0xff] }
  0x4f   :  { %375 = vmatpush1.bf16.msra.mxu0 %v374_v38  ;;  %v111_v38 = vld [vmem:[#allocation5 + $0x1b8] sm:$0xff]  ;;  %v408_v46 = vpack.c.bf16 %v115_v44, %v113_v43  ;;  %v112_v47 = vld [vmem:[#allocation5 + $0x1c0] sm:$0xff]  ;;  %v114_v48 = vld [vmem:[#allocation5 + $0x1d0] sm:$0xff] }
  0x50   :  { %377 = vmatprep.subr.bf16.mxu0 %v376_v41  ;;  %427 = vmatpush3.bf16.msra.mxu1 %v426_v10  ;;  %v404_v40 = vpack.c.bf16 %v111_v38, %v109_v37  ;;  %v108_v41 = vld [vmem:[#allocation5 + $0x1a0] sm:$0xff]  ;;  %v117_v49 = vld [vmem:[#allocation5 + $0x1e8] sm:$0xff]  ;;  %v118_v54 = vld [vmem:[#allocation5 + $0x1f0] sm:$0xff] }
  0x51   :  { %428 = vmatprep.subr.bf16.mxu1 %v554_v0  ;;  %v406_v45 = vpack.c.bf16 %v110_v42, %v108_v41  ;;  %v116_v53 = vld [vmem:[#allocation5 + $0x1e0] sm:$0xff]  ;;  %v54_v56 = vld [vmem:[#allocation2] sm:$0xff]  ;;  %v209_v57 = vld [vmem:[#allocation7 + $0x78] sm:$0xff] }
  0x52   :  { %v414_v55 = vpack.c.bf16 %v118_v54, %v116_v53 }
  0x53   :  { %379 = vmatpush1.bf16.msra.mxu0 %v378_v50  ;;  %v119_v50 = vld [vmem:[#allocation5 + $0x1f8] sm:$0xff] }
  0x54   :  { %381 = vmatprep.subr.bf16.mxu0 %v380_v51  ;;  %430 = vmatpush3.bf16.msra.mxu1 %v429_v19  ;;  %v410_v51 = vpack.c.bf16 %v114_v48, %v112_v47  ;;  %v412_v52 = vpack.c.bf16 %v119_v50, %v117_v49 }
  0x55   :  { %431 = vmatprep.subr.bf16.mxu1 %v554_v0 }
  0x57   :  { %383 = vmatpush1.bf16.msra.mxu0 %v382_v59  ;;  %v556_v59 = vmov 0.0  }
  0x58   :  { %385 = vmatprep.subr.bf16.mxu0 %v384_v60  ;;  %433 = vmatpush3.bf16.msra.mxu1 %v432_v28 }
  0x59   :  { %434 = vmatprep.subr.bf16.mxu1 %v554_v0  ;;  %349 = vmatprep.mubr.msk.f32.mxu1 %vm555_vm0, %v556_v59 }
  0x5b   :  { %387 = vmatpush1.bf16.msra.mxu0 %v386_v5 }
  0x5c   :  { %389 = vmatprep.subr.bf16.mxu0 %v388_v6  ;;  %436 = vmatpush3.bf16.msra.mxu1 %v435_v36 }
  0x5d   :  { %437 = vmatprep.subr.bf16.mxu1 %v554_v0  ;;  %v208_v0 = vld [vmem:[#allocation7 + $0x70] sm:$0xff] }
  0x5e   :  { %v438_v58 = vpack.c.bf16 %v209_v57, %v208_v0 }
  0x5f   :  { %391 = vmatpush1.bf16.msra.mxu0 %v390_v14 }
  0x60   :  { %393 = vmatprep.subr.bf16.mxu0 %v392_v15  ;;  %439 = vmatpush3.bf16.msra.mxu1 %v438_v58 }
  0x63   :  { %395 = vmatpush1.bf16.msra.mxu0 %v394_v23 }
  0x64   :  { %397 = vmatprep.subr.bf16.mxu0 %v396_v24 }
  0x67   :  { %399 = vmatpush1.bf16.msra.mxu0 %v398_v32 }
  0x68   :  { %401 = vmatprep.subr.bf16.mxu0 %v400_v33 }
  0x6b   :  { %403 = vmatpush1.bf16.msra.mxu0 %v402_v39 }
  0x6c   :  { %405 = vmatprep.subr.bf16.mxu0 %v404_v40 }
  0x6f   :  { %407 = vmatpush1.bf16.msra.mxu0 %v406_v45 }
  0x70   :  { %409 = vmatprep.subr.bf16.mxu0 %v408_v46 }
  0x73   :  { %411 = vmatpush1.bf16.msra.mxu0 %v410_v51 }
  0x74   :  { %413 = vmatprep.subr.bf16.mxu0 %v412_v52 }
  0x77   :  { %415 = vmatpush1.bf16.msra.mxu0 %v414_v55 }
  0x7a   :  { %185 = vmatmul.mubr.f32.vlgmr.msra.gmra.mrb[0].mxu0 %v54_v56 }
 0x14d   :  { %v186_v60 = vpop.f32.mrb[0].mxu0 }
 0x14e   :  { %v191_v61 = vmul.f32 %v186_v60, %v186_v60  ;;  %v188_v62 = vpop.f32.mrb[1].mxu0 }
 0x14f   :  { %v192_v63 = vmul.f32 %v188_v62, %v188_v62 }
 0x151   :  { %v193_v1 = vadd.f32 %v192_v63, %v191_v61 }
 0x153   :  { %350 = vmatmul.mubr.f32.vlgmr.msra.gmra.mrb[0].mxu1 %v193_v1 }
 0x226   :  { %v276_v2 = vpop.f32.mrb[0].mxu1 }
 0x227   :  { %v280_v3 = vmax.f32 %v276_v2, 1.1920929e-07  ;;  %v351_v4 = vpop.f32.mrb[1].mxu1 }
 0x229   :  { %451 = vlog2.f32 %v280_v3 }
 0x233   :  { %v452_v5 = vpop.eup %451 }
 0x234   :  { %v282_v6 = vmul.f32 0.6931472, %v452_v5 }
 0x236   :  { %283 = vst [vmem:[#allocation8] sm:$0xff] %v282_v6 }
 0x237   :  { %530 = shalt.err (!%p527_p0)
}
 0x238   :  { %s531_s27 = scalar_lea.hbm %s637_s3, 128 }
 0x239   :  { %p532_p1 = scmp.ne.s32.totalorder %s637_s3, %s531_s27  ;;  %p535_p2 = scmp.lt.u32.totalorder %s531_s27, %s637_s3 }
 0x23b   :  { %p537_p3 = pnand %p535_p2, %p532_p1 }
 0x23d   :  { %540 = shalt.err (!%p537_p3)
}
 0x23e   :  { %293 = dma.vmem_to_hbm [thread:$0]  %s291_s23, 128, %s637_s3, [#allocation4]  }
 0x23f   :  { %545 = dma.done.wait [#allocation4], 128  }
 0x240   :  { %546 = vsyncadd [#allocation4], 4294967168 }
 0x241   :  { %297 = vsyncpa [#allocation3], 1 }
 0x242   :  { %298 = vsyncpa [#allocation6], 1 }
 0x243   :  { %299 = vsyncpa [#allocation4], 1 }

</bundles_post_ra>
